<compile_context>
chip_gen: v7x
topology: tpu7x:2x2x1
jax: 0.10.0
libtpu: 0.0.40
codegen_flags: <defaults>
</compile_context>

<pallas_src>
import functools

import jax
import jax.numpy as jnp
from jax.experimental import pallas as pl
from jax.experimental.pallas import tpu as pltpu


def _predictor_kernel(att_ref, mem0_ref, prod0_ref, mdbT_ref, out_ref, *,
                      num_op, E, thr, no_norm, approx_recip, compute_dtype):
    """One fused propagation step per grid point.  grid = (M/block_m, T).

    out_ref (constant block index along the sequential t axis) carries the
    memory state between steps and holds the final result: no extra scratch,
    exactly one (block_m, E) store per step.
    """
    t = pl.program_id(1)
    att_t = att_ref[t]                                    # (bm, R+1) f32

    def _step(mem_f32, prod_wide):
        # Accumulate entirely in vregs; single store at the end of the step.
        acc = mem_f32 * att_t[:, num_op:num_op + 1]       # "stay" term
        for r in range(num_op):                           # unrolled VPU loop
            acc = acc + prod_wide[:, r * E:(r + 1) * E] * att_t[:, r:r + 1]
        if not no_norm:
            # F.normalize(x, p=1, dim=1, eps=thr) == x / max(||x||_1, thr)
            denom = jnp.maximum(
                jnp.sum(jnp.abs(acc), axis=1, keepdims=True), thr)
            acc = acc * pl.reciprocal(denom, approx=approx_recip)
        out_ref[...] = acc

    # t == 0: memory is one-hot, so memory @ mdbT is a row-gather of mdbT at
    # the tail indices, precomputed in the wrapper -> no matmul here.
    @pl.when(t == 0)
    def _():
        _step(mem0_ref[...], prod0_ref[...].astype(jnp.float32))

    # t > 0: one wide MXU matmul (bm, E) x (E, R*E) replaces R small ones.
    @pl.when(t != 0)
    def _():
        mem = out_ref[...]                                # carried state (f32)
        prod_wide = jnp.dot(mem.astype(compute_dtype), mdbT_ref[...],
                            preferred_element_type=jnp.float32)
        _step(mem, prod_wide)


def _make_predictor_call(M, E, R, T, bm, thr, no_norm, approx_recip,
                         compute_dtype):
    kernel = functools.partial(
        _predictor_kernel, num_op=R, E=E, thr=thr, no_norm=no_norm,
        approx_recip=approx_recip, compute_dtype=compute_dtype)
    return pl.pallas_call(
        kernel,
        out_shape=jax.ShapeDtypeStruct((M, E), jnp.float32),
        grid_spec=pltpu.PrefetchScalarGridSpec(
            num_scalar_prefetch=0,
            grid=(M // bm, T),
            in_specs=[
                # whole attention tensor, one tiny resident block per m-tile
                pl.BlockSpec((T, bm, R + 1), lambda m, t: (0, m, 0)),
                # initial one-hot memory rows for this m-tile
                pl.BlockSpec((bm, E), lambda m, t: (m, 0)),
                # precomputed step-0 product (gather of mdbT rows at tails)
                pl.BlockSpec((bm, R * E), lambda m, t: (m, 0)),
                # all operator matrices, concatenated along N, VMEM-resident
                pl.BlockSpec((E, R * E), lambda m, t: (0, 0)),
            ],
            out_specs=pl.BlockSpec((bm, E), lambda m, t: (m, 0)),
        ),
        compiler_params=pltpu.CompilerParams(
            dimension_semantics=("parallel", "arbitrary"),
            vmem_limit_bytes=32 * 1024 * 1024),
    )


def prepare_mdb(mdb, compute_dtype=jnp.bfloat16):
    """Hoisted preprocessing of the (static) operator matrices.

    Returns mdbT_cat of shape (E, R*E) whose column block r equals mdb[r].T,
    cast to `compute_dtype`.  Call once per mdb update, NOT once per forward.
    """
    R, E, _ = mdb.shape
    return jnp.transpose(mdb, (2, 0, 1)).reshape(E, R * E).astype(compute_dtype)


def predictor_forward(attention_list, tt, mdb, option, *, mdbT_cat=None,
                      compute_dtype=jnp.bfloat16, approx_recip=True,
                      block_m=None):
    """Pallas equivalent of Predictor.forward.

    attention_list: (rank, num_step, B, num_operator + 1) float32
    tt:             (B,) int32 tail-entity indices
    mdb:            (num_operator, E, E) float32 dense operator matrices
                    (sparse mdb of the original code represented densely)
    mdbT_cat:       optional pre-prepared operators from prepare_mdb(), which
                    hoists the transpose / dtype cast out of the per-call path
    compute_dtype:  MXU operand dtype (bf16 default; jnp.float32 for accuracy)
    approx_recip:   use the EUP approximate reciprocal in the L1 normalization
    block_m:        rows per grid block along M = rank*B (default: all of M);
                    e.g. M // 2 on v7x spreads rows over both TensorCores.
    """
    E, R = option.num_entity, option.num_operator
    rank, num_step = option.rank, option.num_step
    B = tt.shape[0]
    T = num_step - 1
    M = rank * B

    tails = jax.nn.one_hot(tt, E, dtype=jnp.float32)              # (B, E)
    if T <= 0:
        # No propagation steps: every rank's memory stays the one-hot tails.
        return rank * tails

    if mdbT_cat is None:
        mdbT_cat = prepare_mdb(mdb, compute_dtype)                # (E, R*E)

    bm = M if block_m is None else block_m
    assert M % bm == 0, "block_m must divide rank * batch"

    mem0 = jnp.tile(tails, (rank, 1))                             # (M, E)
    # Step-0 shortcut: one-hot memory => memory @ mdbT == row gather at tt.
    prod0 = jnp.tile(jnp.take(mdbT_cat, tt, axis=0).astype(jnp.float32),
                     (rank, 1))                                   # (M, R*E)

    # (rank, T, B, R+1) -> (T, rank*B, R+1): one tiny resident VMEM block.
    att = jnp.asarray(attention_list)[:, :T].astype(jnp.float32)
    att = jnp.transpose(att, (1, 0, 2, 3)).reshape(T, M, R + 1)

    call = _make_predictor_call(M, E, R, T, bm, option.thr, option.no_norm,
                                approx_recip, compute_dtype)
    mem_final = call(att, mem0, prod0, mdbT_cat)                  # (M, E)

    # Sum over ranks (rank-major row stacking).
    return jnp.sum(mem_final.reshape(rank, B, E), axis=0)         # (B, E)


def predictor_ref(attention_list, tt, mdb, option):
    """Pure-JAX reference mirroring the PyTorch code (true f32 matmuls)."""
    tails = jax.nn.one_hot(tt, option.num_entity, dtype=jnp.float32)
    memory_list = []
    for i in range(option.rank):
        mem = tails
        for t in range(option.num_step - 1):
            att = attention_list[i][t]
            acc = mem * att[:, -1:]
            for r in range(option.num_operator):
                prod = jnp.dot(mem, mdb[r].T,
                               precision=jax.lax.Precision.HIGHEST)
                acc = acc + prod * att[:, r:r + 1]
            if not option.no_norm:
                acc = acc / jnp.maximum(
                    jnp.sum(jnp.abs(acc), axis=1, keepdims=True), option.thr)
            mem = acc
        memory_list.append(mem)
    return jnp.sum(jnp.stack(memory_list, axis=0), axis=0)


class Option:
    num_entity = 128
    num_operator = 4
    num_step = 3
    rank = 2
    no_norm = False
    thr = 1e-6


if __name__ == "__main__":
    option = Option()
    B = 8
    key = jax.random.PRNGKey(0)
    k1, k2, k3 = jax.random.split(key, 3)

    tt = jax.random.randint(k1, (B,), 0, option.num_entity, dtype=jnp.int32)
    # attention per (rank, step): softmax over (num_operator + 1) choices
    att_logits = jax.random.normal(
        k2, (option.rank, option.num_step, B, option.num_operator + 1),
        dtype=jnp.float32)
    attention_list = jax.nn.softmax(att_logits, axis=-1)
    # dense synthetic operator matrices (sparse mdb in the original code)
    mdb = jax.random.uniform(
        k3, (option.num_operator, option.num_entity, option.num_entity),
        dtype=jnp.float32)

    # Hoisted operator preprocessing (once per mdb update, not per forward).
    mdbT_cat = prepare_mdb(mdb, jnp.bfloat16)

    pred = predictor_forward(attention_list, tt, mdb, option,
                             mdbT_cat=mdbT_cat)
    pred = jax.block_until_ready(pred)

    ref = predictor_ref(attention_list, tt, mdb, option)
    assert pred.shape == (B, option.num_entity)
    # bf16 MXU operands with f32 accumulation -> relaxed tolerance vs the
    # exact-f32 reference (use compute_dtype=jnp.float32 for tight tolerance).
    assert jnp.allclose(pred, ref, rtol=2e-2, atol=2e-3), "mismatch vs reference"

    print("KERNEL_OK")
</pallas_src>

<mosaic_0001>
module attributes {stable_mosaic.version = 11 : i64} {
  func.func @_predictor_kernel(%arg0: i32, %arg1: i32, %arg2: memref<2x16x5xf32, #tpu.memory_space<vmem>>, %arg3: memref<16x128xf32, #tpu.memory_space<vmem>>, %arg4: memref<16x512xf32, #tpu.memory_space<vmem>>, %arg5: memref<128x512xbf16, #tpu.memory_space<vmem>>, %arg6: memref<16x128xf32, #tpu.memory_space<vmem>>) attributes {dimension_semantics = [#tpu.dimension_semantics<parallel>, #tpu.dimension_semantics<arbitrary>], iteration_bounds = array<i64: 1, 2>, scalar_prefetch = 0 : i64, scratch_operands = 0 : i64, tpu.core_type = #tpu.core_type<tc>, window_params = [{transform_indices = @transform_0, window_bounds = array<i64: 2, 16, 5>}, {transform_indices = @transform_1, window_bounds = array<i64: 16, 128>}, {transform_indices = @transform_2, window_bounds = array<i64: 16, 512>}, {pipeline_mode = #tpu.pipeline_mode<synchronous>, transform_indices = @transform_3, window_bounds = array<i64: 128, 512>}, {transform_indices = @transform_4, window_bounds = array<i64: 16, 128>}]} {
    %0 = arith.index_cast %arg1 : i32 to index
    %c0 = arith.constant 0 : index
    %c0_0 = arith.constant 0 : index
    %1 = vector.load %arg2[%0, %c0, %c0_0] : memref<2x16x5xf32, #tpu.memory_space<vmem>>, vector<1x16x5xf32>
    %2 = vector.shape_cast %1 : vector<1x16x5xf32> to vector<16x5xf32>
    %c0_i32 = arith.constant 0 : i32
    %3 = arith.cmpi eq, %arg1, %c0_i32 : i32
    %4 = arith.extui %3 : i1 to i32
    %c0_i32_1 = arith.constant 0 : i32
    %5 = arith.cmpi ne, %4, %c0_i32_1 : i32
    scf.if %5 {
      %c0_4 = arith.constant 0 : index
      %c0_5 = arith.constant 0 : index
      %9 = vector.load %arg3[%c0_4, %c0_5] : memref<16x128xf32, #tpu.memory_space<vmem>>, vector<16x128xf32>
      %c0_6 = arith.constant 0 : index
      %c0_7 = arith.constant 0 : index
      %10 = vector.load %arg4[%c0_6, %c0_7] : memref<16x512xf32, #tpu.memory_space<vmem>>, vector<16x512xf32>
      %11 = vector.extract_strided_slice %2 {offsets = [0, 4], sizes = [16, 1], strides = [1, 1]} : vector<16x5xf32> to vector<16x1xf32>
      %12 = vector.broadcast %11 : vector<16x1xf32> to vector<16x128xf32>
      %13 = arith.mulf %9, %12 : vector<16x128xf32>
      %14 = vector.extract_strided_slice %10 {offsets = [0, 0], sizes = [16, 128], strides = [1, 1]} : vector<16x512xf32> to vector<16x128xf32>
      %15 = vector.extract_strided_slice %2 {offsets = [0, 0], sizes = [16, 1], strides = [1, 1]} : vector<16x5xf32> to vector<16x1xf32>
      %16 = vector.broadcast %15 : vector<16x1xf32> to vector<16x128xf32>
      %17 = arith.mulf %14, %16 : vector<16x128xf32>
      %18 = arith.addf %13, %17 : vector<16x128xf32>
      %19 = vector.extract_strided_slice %10 {offsets = [0, 128], sizes = [16, 128], strides = [1, 1]} : vector<16x512xf32> to vector<16x128xf32>
      %20 = vector.extract_strided_slice %2 {offsets = [0, 1], sizes = [16, 1], strides = [1, 1]} : vector<16x5xf32> to vector<16x1xf32>
      %21 = vector.broadcast %20 : vector<16x1xf32> to vector<16x128xf32>
      %22 = arith.mulf %19, %21 : vector<16x128xf32>
      %23 = arith.addf %18, %22 : vector<16x128xf32>
      %24 = vector.extract_strided_slice %10 {offsets = [0, 256], sizes = [16, 128], strides = [1, 1]} : vector<16x512xf32> to vector<16x128xf32>
      %25 = vector.extract_strided_slice %2 {offsets = [0, 2], sizes = [16, 1], strides = [1, 1]} : vector<16x5xf32> to vector<16x1xf32>
      %26 = vector.broadcast %25 : vector<16x1xf32> to vector<16x128xf32>
      %27 = arith.mulf %24, %26 : vector<16x128xf32>
      %28 = arith.addf %23, %27 : vector<16x128xf32>
      %29 = vector.extract_strided_slice %10 {offsets = [0, 384], sizes = [16, 128], strides = [1, 1]} : vector<16x512xf32> to vector<16x128xf32>
      %30 = vector.extract_strided_slice %2 {offsets = [0, 3], sizes = [16, 1], strides = [1, 1]} : vector<16x5xf32> to vector<16x1xf32>
      %31 = vector.broadcast %30 : vector<16x1xf32> to vector<16x128xf32>
      %32 = arith.mulf %29, %31 : vector<16x128xf32>
      %33 = arith.addf %28, %32 : vector<16x128xf32>
      %34 = math.absf %33 : vector<16x128xf32>
      %cst = arith.constant dense<0.000000e+00> : vector<16xf32>
      %35 = vector.multi_reduction <add>, %34, %cst [1] : vector<16x128xf32> to vector<16xf32>
      %36 = vector.shape_cast %35 : vector<16xf32> to vector<16x1xf32>
      %cst_8 = arith.constant 9.99999997E-7 : f32
      %37 = vector.broadcast %cst_8 : f32 to vector<16x1xf32>
      %38 = arith.maximumf %36, %37 : vector<16x1xf32>
      %39 = tpu.reciprocal %38 {approx = true} : vector<16x1xf32> -> vector<16x1xf32>
      %40 = vector.broadcast %39 : vector<16x1xf32> to vector<16x128xf32>
      %41 = arith.mulf %33, %40 : vector<16x128xf32>
      %c0_9 = arith.constant 0 : index
      %c0_10 = arith.constant 0 : index
      %42 = vector.load %arg6[%c0_9, %c0_10] : memref<16x128xf32, #tpu.memory_space<vmem>>, vector<16x128xf32>
      tpu.vector_store %arg6[%c0_9, %c0_10], %41 {strides = array<i32>} : memref<16x128xf32, #tpu.memory_space<vmem>>, vector<16x128xf32>,
    } else {
    }
    %c0_i32_2 = arith.constant 0 : i32
    %6 = arith.cmpi ne, %arg1, %c0_i32_2 : i32
    %7 = arith.extui %6 : i1 to i32
    %c0_i32_3 = arith.constant 0 : i32
    %8 = arith.cmpi ne, %7, %c0_i32_3 : i32
    scf.if %8 {
      %c0_4 = arith.constant 0 : index
      %c0_5 = arith.constant 0 : index
      %9 = vector.load %arg6[%c0_4, %c0_5] : memref<16x128xf32, #tpu.memory_space<vmem>>, vector<16x128xf32>
      %10 = arith.truncf %9 : vector<16x128xf32> to vector<16x128xbf16>
      %c0_6 = arith.constant 0 : index
      %c0_7 = arith.constant 0 : index
      %11 = vector.load %arg5[%c0_6, %c0_7] : memref<128x512xbf16, #tpu.memory_space<vmem>>, vector<128x512xbf16>
      %cst = arith.constant dense<0.000000e+00> : vector<16x512xf32>
      %12 = tpu.matmul %10, %11, %cst {dimension_numbers = #tpu.dot_dimension_numbers<[1], [0], [0], [1], [0, 0, 1, 1], [], []>} : vector<16x128xbf16>, vector<128x512xbf16>, vector<16x512xf32> -> vector<16x512xf32>
      %13 = vector.extract_strided_slice %2 {offsets = [0, 4], sizes = [16, 1], strides = [1, 1]} : vector<16x5xf32> to vector<16x1xf32>
      %14 = vector.broadcast %13 : vector<16x1xf32> to vector<16x128xf32>
      %15 = arith.mulf %9, %14 : vector<16x128xf32>
      %16 = vector.extract_strided_slice %12 {offsets = [0, 0], sizes = [16, 128], strides = [1, 1]} : vector<16x512xf32> to vector<16x128xf32>
      %17 = vector.extract_strided_slice %2 {offsets = [0, 0], sizes = [16, 1], strides = [1, 1]} : vector<16x5xf32> to vector<16x1xf32>
      %18 = vector.broadcast %17 : vector<16x1xf32> to vector<16x128xf32>
      %19 = arith.mulf %16, %18 : vector<16x128xf32>
      %20 = arith.addf %15, %19 : vector<16x128xf32>
      %21 = vector.extract_strided_slice %12 {offsets = [0, 128], sizes = [16, 128], strides = [1, 1]} : vector<16x512xf32> to vector<16x128xf32>
      %22 = vector.extract_strided_slice %2 {offsets = [0, 1], sizes = [16, 1], strides = [1, 1]} : vector<16x5xf32> to vector<16x1xf32>
      %23 = vector.broadcast %22 : vector<16x1xf32> to vector<16x128xf32>
      %24 = arith.mulf %21, %23 : vector<16x128xf32>
      %25 = arith.addf %20, %24 : vector<16x128xf32>
      %26 = vector.extract_strided_slice %12 {offsets = [0, 256], sizes = [16, 128], strides = [1, 1]} : vector<16x512xf32> to vector<16x128xf32>
      %27 = vector.extract_strided_slice %2 {offsets = [0, 2], sizes = [16, 1], strides = [1, 1]} : vector<16x5xf32> to vector<16x1xf32>
      %28 = vector.broadcast %27 : vector<16x1xf32> to vector<16x128xf32>
      %29 = arith.mulf %26, %28 : vector<16x128xf32>
      %30 = arith.addf %25, %29 : vector<16x128xf32>
      %31 = vector.extract_strided_slice %12 {offsets = [0, 384], sizes = [16, 128], strides = [1, 1]} : vector<16x512xf32> to vector<16x128xf32>
      %32 = vector.extract_strided_slice %2 {offsets = [0, 3], sizes = [16, 1], strides = [1, 1]} : vector<16x5xf32> to vector<16x1xf32>
      %33 = vector.broadcast %32 : vector<16x1xf32> to vector<16x128xf32>
      %34 = arith.mulf %31, %33 : vector<16x128xf32>
      %35 = arith.addf %30, %34 : vector<16x128xf32>
      %36 = math.absf %35 : vector<16x128xf32>
      %cst_8 = arith.constant dense<0.000000e+00> : vector<16xf32>
      %37 = vector.multi_reduction <add>, %36, %cst_8 [1] : vector<16x128xf32> to vector<16xf32>
      %38 = vector.shape_cast %37 : vector<16xf32> to vector<16x1xf32>
      %cst_9 = arith.constant 9.99999997E-7 : f32
      %39 = vector.broadcast %cst_9 : f32 to vector<16x1xf32>
      %40 = arith.maximumf %38, %39 : vector<16x1xf32>
      %41 = tpu.reciprocal %40 {approx = true} : vector<16x1xf32> -> vector<16x1xf32>
      %42 = vector.broadcast %41 : vector<16x1xf32> to vector<16x128xf32>
      %43 = arith.mulf %35, %42 : vector<16x128xf32>
      %c0_10 = arith.constant 0 : index
      %c0_11 = arith.constant 0 : index
      %44 = vector.load %arg6[%c0_10, %c0_11] : memref<16x128xf32, #tpu.memory_space<vmem>>, vector<16x128xf32>
      tpu.vector_store %arg6[%c0_10, %c0_11], %43 {strides = array<i32>} : memref<16x128xf32, #tpu.memory_space<vmem>>, vector<16x128xf32>,
    } else {
    }
    return
  }
  func.func @transform_0(%arg0: i32, %arg1: i32) -> (i32, i32, i32) {
    %c0_i32 = arith.constant 0 : i32
    %c0_i32_0 = arith.constant 0 : i32
    %c0_i32_1 = arith.constant 0 : i32
    return %c0_i32, %arg0, %c0_i32_0 : i32, i32, i32
  }
  func.func @transform_1(%arg0: i32, %arg1: i32) -> (i32, i32) {
    %c0_i32 = arith.constant 0 : i32
    %c0_i32_0 = arith.constant 0 : i32
    return %arg0, %c0_i32 : i32, i32
  }
  func.func @transform_2(%arg0: i32, %arg1: i32) -> (i32, i32) {
    %c0_i32 = arith.constant 0 : i32
    %c0_i32_0 = arith.constant 0 : i32
    return %arg0, %c0_i32 : i32, i32
  }
  func.func @transform_3(%arg0: i32, %arg1: i32) -> (i32, i32) {
    %c0_i32 = arith.constant 0 : i32
    %c0_i32_0 = arith.constant 0 : i32
    %c0_i32_1 = arith.constant 0 : i32
    return %c0_i32, %c0_i32_0 : i32, i32
  }
  func.func @transform_4(%arg0: i32, %arg1: i32) -> (i32, i32) {
    %c0_i32 = arith.constant 0 : i32
    %c0_i32_0 = arith.constant 0 : i32
    return %arg0, %c0_i32 : i32, i32
  }
}

</mosaic_0001>

<bundles_post_ra>
// kernel: tpu_custom_call.1
= control target key start
LH: loop header
LB: loop body
LE: loop exit
PB: predicated region body
PF: predicated region fallthrough
CT: control target
= control target key end

     0   :  { %9 = vsyncpa [#allocation3], 0  ;;  %s1345_s0 = inlined_call_operand.vmem [shape: f32[2,16,5], index: 0, kind: input, shape index: {}]   ;;  %s1346_s1 = inlined_call_operand.vmem [shape: f32[16,128], index: 1, kind: input, shape index: {}]   ;;  %s1347_s2 = inlined_call_operand.hbm [shape: f32[16,512], index: 2, kind: input, shape index: {}]   ;;  %s1348_s3 = inlined_call_operand.hbm [shape: bf16[128,512], index: 3, kind: input, shape index: {}]   ;;  %s1349_s4 = inlined_call_operand.hbm [shape: f32[16,128], index: 4, kind: output, shape index: {}]  }
   0x1   :  { %10 = vsyncpa [#allocation6], 0 }
   0x2   :  { %11 = vsyncpa [#allocation4], 0  ;;  %s1174_s15 = smov 0   ;;  %s1176_s16 = smov 0  }
   0x3   :  { %s1178_s17 = smov 0  }
   0x4 LB: > { %s824_s18 = sadd.s32 4294967295, %s1128_s17   ;;  %s26_s19 = sadd.s32 1, %s1124_s16  ;;  %s1128_s17 = sphi %s1178_s17, %s17_s17   ;;  %s1124_s16 = sphi %s1176_s16, %s1360_s16   ;;  %s1120_s15 = sphi %s1174_s15, %s1359_s15  }
   0x5   : > { %p27_p0 = scmp.ge.s32.totalorder %s26_s19, 2  ;;  %p825_p1 = scmp.ge.s32.totalorder %s1128_s17, 1 }
   0x6   : > { %p159_p2 = scmp.lt.s32.totalorder %s1128_s17, 3  ;;  %p1201_p4 = scmp.eq.s32.totalorder %s824_s18, 0 }
   0x7   : > { %s1362_s19 = smov (%p27_p0, %s26_s19), 0  ;;  %s1130_s22 = smov [#allocation2]  }
   0x8   : > { %p1195_p3 = pnand %p825_p1, %p159_p2  ;;  %s193_s23 = sshll.u32 %s1130_s22, 4  ;;  %s194_s23 = int_to_ptr.vmem [resolvable:$true] %s193_s23 }
   0x9   : > { %s1354_s21 = scalar_select %p1201_p4, 1, 0 }
   0xa   : > { %s1353_s20 = scalar_select %p1195_p3, 1, 0 }
   0xb   : > { %p884_p5 = pneg %p1195_p3  ;;  %s1131_s25 = smov [#allocation5]  }
   0xc   : > { %s206_s26 = sshll.u32 %s1131_s25, 4  ;;  %s1012_s29 = scalar_lea.hbm %s1347_s2, 1024  ;;  %s1213_s26 = int_to_ptr.vmem [resolvable:$true] %s206_s26 }
   0xd   : > { %p1209_p6 = pnand %p1201_p4, %p884_p5  ;;  %p1013_p7 = scmp.ne.s32.totalorder %s1347_s2, %s1012_s29 }
   0xe   : > { %p1019_p11 = scmp.lt.u32.totalorder %s1012_s29, %s1347_s2 }
   0xf   : > { %p1014_p8 = pneg %p1209_p6 }
  0x11   : > { %p1015_p9 = pnand %p1014_p8, %p1013_p7 }
  0x13   : > { %p1016_p10 = pneg %p1015_p9 }
  0x15   : > { %p1021_p12 = pnand %p1019_p11, %p1016_p10 }
  0x17   : > { %1024 = shalt.err (!%p1021_p12)
}
  0x18   : > { %s1025_s8 = scalar_lea.vmem %s194_s23, 1024  ;;  %p1033_p2 = scmp.lt.s32.totalorder %s194_s23, %s194_s23 }
  0x19   : > { %p1026_p13 = scmp.ne.s32.totalorder %s194_s23, %s1025_s8  ;;  %p1034_p5 = scmp.lt.s32.totalorder %s1025_s8, %s1025_s8 }
  0x1b   : > { %p1028_p0 = pnand %p1026_p13, %p1014_p8  ;;  %p1035_p4 = por %p1034_p5, %p1033_p2 }
  0x1d   : > { %p1029_p1 = pneg %p1028_p0 }
  0x1f   : > { %p1036_p3 = pnand %p1035_p4, %p1029_p1 }
  0x21   : > { %1039 = shalt.err (!%p1036_p3)
}
  0x22   : > { %s1132_s9 = smov 512   ;;  %s1133_s10 = smov 32  }
  0x23   : > { %887 = dma.hbm_to_vmem [thread:$0]  (!%p1209_p6), %s1347_s2, 1024, %s194_s23, [#allocation3], %s1132_s9, %s1132_s9, %s1133_s10  }
  0x24   : > { %s1040_s22 = scalar_lea.hbm %s1348_s3, 4096 }
  0x25   : > { %p1041_p7 = scmp.ne.s32.totalorder %s1348_s3, %s1040_s22  ;;  %p1047_p9 = scmp.lt.u32.totalorder %s1040_s22, %s1348_s3 }
  0x27   : > { %p1043_p3 = pnand %p1041_p7, %p1014_p8 }
  0x29   : > { %p1044_p4 = pneg %p1043_p3 }
  0x2b   : > { %p1049_p10 = pnand %p1047_p9, %p1044_p4 }
  0x2d   : > { %1052 = shalt.err (!%p1049_p10)
}
  0x2e   : > { %s1053_s23 = scalar_lea.vmem %s1213_s26, 4096  ;;  %p1061_p0 = scmp.lt.s32.totalorder %s1213_s26, %s1213_s26 }
  0x2f   : > { %p1054_p11 = scmp.ne.s32.totalorder %s1213_s26, %s1053_s23  ;;  %p1062_p1 = scmp.lt.s32.totalorder %s1053_s23, %s1053_s23 }
  0x31   : > { %p1056_p12 = pnand %p1054_p11, %p1014_p8  ;;  %p1063_p2 = por %p1062_p1, %p1061_p0 }
  0x33   : > { %p1057_p13 = pneg %p1056_p12 }
  0x35   : > { %p1064_p5 = pnand %p1063_p2, %p1057_p13 }
  0x37   : > { %1067 = shalt.err (!%p1064_p5)
}
  0x38   : > { %s1134_s30 = smov 256   ;;  %s1135_s5 = smov 16  }
  0x39   : > { %890 = dma.hbm_to_vmem [thread:$0]  (!%p1209_p6), %s1348_s3, 4096, %s1213_s26, [#allocation6], %s1134_s30, %s1134_s30, %s1135_s5  }
  0x3a   : > { %p1356_p7 = scmp.ne.s32.totalorder %s1353_s20, 0 }
  0x3b   : > { %p1357_p8 = scmp.ne.s32.totalorder (!%p1356_p7), %s1354_s21, 0 }
  0x3c   : > { %222 = sbr.rel (%p1356_p7) target bundleno = 834 (0x342), region = 36 }
  0x43   : > { %1107 = dma.done.wait (%p1357_p8), [#allocation3], 1024  }
  0x44   : > { %1109 = vsyncadd (%p1357_p8), [#allocation3], 4294966272 }
  0x45   : > { %1111 = dma.done.wait (%p1357_p8), [#allocation6], 4096  }
  0x46   : > { %1113 = vsyncadd (%p1357_p8), [#allocation6], 4294963200  ;;  %s833_s24 = sshll.u32 %s1120_s15, 4  ;;  %p834_p6 = scmp.ne.s32.totalorder %s1120_s15, 0 }
  0x47   : > { %s268_s26 = scalar_lea.vmem %s1345_s0, %s833_s24  ;;  %v1136_v2 = vmov (!%p834_p6), 0   ;;  %v1137_v3 = vmov (!%p834_p6), 4   ;;  %v1138_v4 = vmov (!%p834_p6), 1   ;;  %v1139_v5 = vmov (!%p834_p6), 2   ;;  %v277_v11 = vld [vmem:[#allocation2] sm:$0xff] (!%p834_p6)  ;;  %v275_v12 = vld [vmem:[%s1346_s1] sm:$0xff] (!%p834_p6) }
  0x48   : > { %v1276_v0 = vld [vmem:[%s268_s26] sm:$0xff]  ;;  %v1278_v1 = vld [vmem:[%s268_s26 + $0x8] sm:$0xff]  ;;  %274 = sbr.rel (%p834_p6) target bundleno = 388 (0x184), region = 48  ;;  %941 = vset.pattern.permute.xlu1 (!%p834_p6), %v1136_v2  ;;  %940 = vset.pattern.permute.xlu0 (!%p834_p6), %v1137_v3  ;;  %v1140_v6 = vmov (!%p834_p6), 3   ;;  %v278_v15 = vld [vmem:[#allocation2 + $0x8] sm:$0xff] (!%p834_p6) }
  0x49   : > { %298 = vperm.xlu1 (!%p834_p6), %941, %v1276_v0   ;;  %287 = vperm.xlu0 (!%p834_p6), %940, %v1276_v0   ;;  %v281_v18 = vld [vmem:[#allocation2 + $0x20] sm:$0xff] (!%p834_p6)  ;;  %v276_v19 = vld [vmem:[%s1346_s1 + $0x8] sm:$0xff] (!%p834_p6)  ;;  %v279_v20 = vld [vmem:[#allocation2 + $0x10] sm:$0xff] (!%p834_p6) }
  0x4a   : > { %v282_v23 = vld [vmem:[#allocation2 + $0x28] sm:$0xff] (!%p834_p6)  ;;  %v283_v29 = vld [vmem:[#allocation2 + $0x30] sm:$0xff] (!%p834_p6)  ;;  %v280_v30 = vld [vmem:[#allocation2 + $0x18] sm:$0xff] (!%p834_p6) }
  0x4b   : > { %v284_v38 = vld [vmem:[#allocation2 + $0x38] sm:$0xff] (!%p834_p6) }
  0x4d   : > { %302 = vperm.xlu1 (!%p834_p6), %941, %v1278_v1   ;;  %292 = vperm.xlu0 (!%p834_p6), %940, %v1278_v1  }
  0x51   : > { %943 = vset.pattern.permute.xlu1 %v1138_v4  ;;  %942 = vset.pattern.permute.xlu0 %v1138_v4 }
  0x52   : > { %314 = vperm.xlu1 %943, %v1278_v1   ;;  %310 = vperm.xlu0 %942, %v1276_v0  }
  0x56   : > { %944 = vset.pattern.permute.xlu1 %v1139_v5  ;;  %945 = vset.pattern.permute.xlu0 %v1139_v5 }
  0x57   : > { %322 = vperm.xlu1 %944, %v1276_v0   ;;  %326 = vperm.xlu0 %945, %v1278_v1  }
  0x5b   : > { %946 = vset.pattern.permute.xlu1 %v1140_v6  ;;  %947 = vset.pattern.permute.xlu0 %v1140_v6 }
  0x5c   : > { %334 = vperm.xlu1 %946, %v1276_v0  }
  0x60   : > { %338 = vperm.xlu1 %946, %v1278_v1  }
  0xc8   : > { %v299_v7 = vpop.permute.xlu1 %298  ;;  %v288_v8 = vpop.permute.xlu0 %287 }
  0xc9   : > { %v305_v16 = vmul.f32 %v299_v7, %v277_v11  ;;  %v295_v17 = vmul.f32 %v288_v8, %v275_v12 }
  0xcb   : > { %v307_v24 = vadd.f32 %v305_v16, %v295_v17 }
  0xcc   : > { %v303_v9 = vpop.permute.xlu1 %302  ;;  %v293_v10 = vpop.permute.xlu0 %292 }
  0xcd   : > { %v306_v25 = vmul.f32 %v303_v9, %v281_v18  ;;  %v296_v26 = vmul.f32 %v293_v10, %v276_v19 }
  0xcf   : > { %v308_v34 = vadd.f32 %v306_v25, %v296_v26 }
  0xd1   : > { %v315_v13 = vpop.permute.xlu1 %314  ;;  %v311_v14 = vpop.permute.xlu0 %310 }
  0xd2   : > { %v317_v21 = vmul.f32 %v311_v14, %v278_v15  ;;  %v318_v31 = vmul.f32 %v315_v13, %v282_v23 }
  0xd4   : > { %v319_v32 = vadd.f32 %v317_v21, %v307_v24  ;;  %v320_v39 = vadd.f32 %v318_v31, %v308_v34 }
  0xd6   : > { %v323_v22 = vpop.permute.xlu1 %322  ;;  %v327_v28 = vpop.permute.xlu0 %326 }
  0xd7   : > { %v329_v27 = vmul.f32 %v323_v22, %v279_v20  ;;  %v330_v36 = vmul.f32 %v327_v28, %v283_v29 }
  0xd9   : > { %v331_v35 = vadd.f32 %v329_v27, %v319_v32  ;;  %v332_v42 = vadd.f32 %v330_v36, %v320_v39 }
  0xdb   : > { %v335_v33 = vpop.permute.xlu1 %334 }
  0xdc   : > { %v341_v37 = vmul.f32 %v335_v33, %v280_v30 }
  0xde   : > { %v343_v40 = vadd.f32 %v341_v37, %v331_v35 }
  0xdf   : > { %v339_v41 = vpop.permute.xlu1 %338 }
  0xe0   : > { %v342_v43 = vmul.f32 %v339_v41, %v284_v38  ;;  %v345_v44 = vand.u32 2147483647, %v343_v40 }
  0xe2   : > { %v344_v45 = vadd.f32 %v342_v43, %v332_v42  ;;  %347 = vadd.xlane.f32.xlu0 %v345_v44 }
  0xe4   : > { %v346_v46 = vand.u32 2147483647, %v344_v45 }
  0xe6   : > { %349 = vadd.xlane.f32.xlu1 %v346_v46 }
 0x16f   : > { %v348_v47 = vpop.xlane.xlu0 %347 }
 0x170   : > { %v351_v48 = vmax.f32 %v348_v47, 1e-06 }
 0x172   : > { %948 = vrcp.f32 %v351_v48 }
 0x173   : > { %v350_v49 = vpop.xlane.xlu1 %349 }
 0x174   : > { %v352_v50 = vmax.f32 %v350_v49, 1e-06 }
 0x176   : > { %950 = vrcp.f32 %v352_v50 }
 0x17c   : > { %v949_v51 = vpop.eup %948 }
 0x17d   : > { %v355_v52 = vmul.f32 %v949_v51, %v343_v40 }
 0x17f   : > { %357 = vst [vmem:[#allocation7] sm:$0xff] %v355_v52 }
 0x180   : > { %v951_v53 = vpop.eup %950 }
 0x181   : > { %v356_v54 = vmul.f32 %v951_v53, %v344_v45 }
 0x183   : > { %358 = vst [vmem:[#allocation7 + $0x8] sm:$0xff] %v356_v54 }
 0x184 PF: > { %p835_p3 = scmp.eq.s32.totalorder %s1120_s15, 0 }
 0x185   : > { %v960_v55 = vld [vmem:[#allocation5 + $0x4] ss:$16 sps:$4 sm:$0xff] (!%p835_p3)   ;;  %v962_v56 = vld [vmem:[#allocation5 + $0xc] ss:$16 sps:$4 sm:$0xff] (!%p835_p3)   ;;  %v1141_v57 = vmov (!%p835_p3), 0   ;;  %v1142_v2 = vmov (!%p835_p3), 4  }
 0x186   : > { %362 = sbr.rel (%p835_p3) target bundleno = 808 (0x328), region = 52  ;;  %590 = vmatprep.mubr.bf16.mxu0 (!%p835_p3), %v1141_v57  ;;  %633 = vmatprep.mubr.bf16.mxu1 (!%p835_p3), %v1141_v57  ;;  %v964_v58 = vld [vmem:[#allocation5] ss:$16 sps:$4 sm:$0xff] (!%p835_p3)   ;;  %v965_v59 = vld [vmem:[#allocation5 + $0x8] ss:$16 sps:$4 sm:$0xff] (!%p835_p3)   ;;  %v1143_v10 = vmov (!%p835_p3), 1  }
 0x187   : > { %558 = vmatprep.subr.bf16.mxu0 (!%p835_p3), %v960_v55  ;;  %953 = vset.pattern.permute.xlu1 (!%p835_p3), %v1141_v57  ;;  %v966_v60 = vld [vmem:[#allocation5 + $0x24] ss:$16 sps:$4 sm:$0xff] (!%p835_p3)   ;;  %v968_v61 = vld [vmem:[#allocation5 + $0x2c] ss:$16 sps:$4 sm:$0xff] (!%p835_p3)   ;;  %v970_v62 = vld [vmem:[#allocation5 + $0x20] ss:$16 sps:$4 sm:$0xff] (!%p835_p3)  }
 0x188   : > { %601 = vmatprep.subr.bf16.mxu1 (!%p835_p3), %v962_v56  ;;  %657 = vperm.xlu1 (!%p835_p3), %953, %v1276_v0   ;;  %v971_v63 = vld [vmem:[#allocation5 + $0x28] ss:$16 sps:$4 sm:$0xff] (!%p835_p3)   ;;  %v972_v3 = vld [vmem:[#allocation5 + $0x44] ss:$16 sps:$4 sm:$0xff] (!%p835_p3)   ;;  %v974_v4 = vld [vmem:[#allocation5 + $0x4c] ss:$16 sps:$4 sm:$0xff] (!%p835_p3)  }
 0x189   : > { %559 = vmatpush1.bf16.msra.mxu0 (!%p835_p3), %v964_v58  ;;  %602 = vmatpush1.bf16.msra.mxu1 (!%p835_p3), %v965_v59  ;;  %v976_v5 = vld [vmem:[#allocation5 + $0x40] ss:$16 sps:$4 sm:$0xff] (!%p835_p3)   ;;  %v977_v6 = vld [vmem:[#allocation5 + $0x48] ss:$16 sps:$4 sm:$0xff] (!%p835_p3)   ;;  %v978_v7 = vld [vmem:[#allocation5 + $0x64] ss:$16 sps:$4 sm:$0xff] (!%p835_p3)  }
 0x18a   : > { %560 = vmatprep.subr.bf16.mxu0 (!%p835_p3), %v966_v60  ;;  %952 = vset.pattern.permute.xlu0 (!%p835_p3), %v1142_v2  ;;  %v980_v8 = vld [vmem:[#allocation5 + $0x6c] ss:$16 sps:$4 sm:$0xff] (!%p835_p3)   ;;  %v982_v9 = vld [vmem:[#allocation5 + $0x60] ss:$16 sps:$4 sm:$0xff] (!%p835_p3)   ;;  %v983_v11 = vld [vmem:[#allocation5 + $0x68] ss:$16 sps:$4 sm:$0xff] (!%p835_p3)  }
 0x18b   : > { %603 = vmatprep.subr.bf16.mxu1 (!%p835_p3), %v968_v61  ;;  %646 = vperm.xlu0 (!%p835_p3), %952, %v1276_v0   ;;  %v984_v12 = vld [vmem:[#allocation5 + $0x84] ss:$16 sps:$4 sm:$0xff] (!%p835_p3)   ;;  %v986_v13 = vld [vmem:[#allocation5 + $0x8c] ss:$16 sps:$4 sm:$0xff] (!%p835_p3)   ;;  %v988_v14 = vld [vmem:[#allocation5 + $0x80] ss:$16 sps:$4 sm:$0xff] (!%p835_p3)  }
 0x18c   : > { %661 = vperm.xlu1 (!%p835_p3), %953, %v1278_v1   ;;  %v989_v15 = vld [vmem:[#allocation5 + $0x88] ss:$16 sps:$4 sm:$0xff] (!%p835_p3)   ;;  %v990_v16 = vld [vmem:[#allocation5 + $0xa4] ss:$16 sps:$4 sm:$0xff] (!%p835_p3)   ;;  %v992_v17 = vld [vmem:[#allocation5 + $0xac] ss:$16 sps:$4 sm:$0xff] (!%p835_p3)  }
 0x18d   : > { %561 = vmatpush1.bf16.msra.mxu0 %v970_v62  ;;  %604 = vmatpush1.bf16.msra.mxu1 %v971_v63  ;;  %v1144_v18 = vmov 2   ;;  %v994_v19 = vld [vmem:[#allocation5 + $0xa0] ss:$16 sps:$4 sm:$0xff]   ;;  %v995_v20 = vld [vmem:[#allocation5 + $0xa8] ss:$16 sps:$4 sm:$0xff]   ;;  %v1145_v23 = vmov 3  }
 0x18e   : > { %562 = vmatprep.subr.bf16.mxu0 %v972_v3  ;;  %605 = vmatprep.subr.bf16.mxu1 %v974_v4  ;;  %v996_v21 = vld [vmem:[#allocation5 + $0xc4] ss:$16 sps:$4 sm:$0xff]   ;;  %v998_v22 = vld [vmem:[#allocation5 + $0xcc] ss:$16 sps:$4 sm:$0xff]   ;;  %v1000_v24 = vld [vmem:[#allocation5 + $0xc0] ss:$16 sps:$4 sm:$0xff]  }
 0x18f   : > { %651 = vperm.xlu0 %952, %v1278_v1   ;;  %v1001_v25 = vld [vmem:[#allocation5 + $0xc8] ss:$16 sps:$4 sm:$0xff]   ;;  %v1002_v26 = vld [vmem:[#allocation5 + $0xe4] ss:$16 sps:$4 sm:$0xff]   ;;  %v1004_v27 = vld [vmem:[#allocation5 + $0xec] ss:$16 sps:$4 sm:$0xff]  }
 0x190   : > { %955 = vset.pattern.permute.xlu1 %v1143_v10  ;;  %v1006_v28 = vld [vmem:[#allocation5 + $0xe0] ss:$16 sps:$4 sm:$0xff]   ;;  %v1007_v29 = vld [vmem:[#allocation5 + $0xe8] ss:$16 sps:$4 sm:$0xff]  }
 0x191   : > { %563 = vmatpush1.bf16.msra.mxu0 %v976_v5  ;;  %606 = vmatpush1.bf16.msra.mxu1 %v977_v6  ;;  %v363_v30 = vld [vmem:[#allocation7] sm:$0xff]  ;;  %v364_v31 = vld [vmem:[#allocation7 + $0x8] sm:$0xff] }
 0x192   : > { %564 = vmatprep.subr.bf16.mxu0 %v978_v7  ;;  %607 = vmatprep.subr.bf16.mxu1 %v980_v8  ;;  %v365_v32 = vpack.c.bf16 %v364_v31, %v363_v30 }
 0x193   : > { %673 = vperm.xlu1 %955, %v1278_v1   ;;  %954 = vset.pattern.permute.xlu0 %v1143_v10 }
 0x194   : > { %669 = vperm.xlu0 %954, %v1276_v0  }
 0x195   : > { %565 = vmatpush1.bf16.msra.mxu0 %v982_v9  ;;  %608 = vmatpush1.bf16.msra.mxu1 %v983_v11 }
 0x196   : > { %566 = vmatprep.subr.bf16.mxu0 %v984_v12  ;;  %609 = vmatprep.subr.bf16.mxu1 %v986_v13 }
 0x197   : > { %956 = vset.pattern.permute.xlu1 %v1144_v18 }
 0x198   : > { %681 = vperm.xlu1 %956, %v1276_v0   ;;  %957 = vset.pattern.permute.xlu0 %v1144_v18 }
 0x199   : > { %567 = vmatpush1.bf16.msra.mxu0 %v988_v14  ;;  %610 = vmatpush1.bf16.msra.mxu1 %v989_v15 }
 0x19a   : > { %568 = vmatprep.subr.bf16.mxu0 %v990_v16  ;;  %611 = vmatprep.subr.bf16.mxu1 %v992_v17 }
 0x19b   : > { %685 = vperm.xlu0 %957, %v1278_v1  }
 0x19c   : > { %958 = vset.pattern.permute.xlu1 %v1145_v23 }
 0x19d   : > { %569 = vmatpush1.bf16.msra.mxu0 %v994_v19  ;;  %612 = vmatpush1.bf16.msra.mxu1 %v995_v20 }
 0x19e   : > { %570 = vmatprep.subr.bf16.mxu0 %v996_v21  ;;  %613 = vmatprep.subr.bf16.mxu1 %v998_v22 }
 0x19f   : > { %693 = vperm.xlu1 %958, %v1276_v0   ;;  %959 = vset.pattern.permute.xlu0 %v1145_v23 }
 0x1a1   : > { %571 = vmatpush1.bf16.msra.mxu0 %v1000_v24  ;;  %614 = vmatpush1.bf16.msra.mxu1 %v1001_v25 }
 0x1a2   : > { %572 = vmatprep.subr.bf16.mxu0 %v1002_v26  ;;  %615 = vmatprep.subr.bf16.mxu1 %v1004_v27 }
 0x1a3   : > { %697 = vperm.xlu1 %958, %v1278_v1  }
 0x1a5   : > { %573 = vmatpush1.bf16.msra.mxu0 %v1006_v28  ;;  %616 = vmatpush1.bf16.msra.mxu1 %v1007_v29 }
 0x1a8   : > { %591 = vmatmul.mubr.bf16.vlgmr.msra.gmra.mrb[0].mxu0 %v365_v32  ;;  %634 = vmatmul.mubr.bf16.vlgmr.msra.gmra.mrb[0].mxu1 %v365_v32 }
 0x207   : > { %v658_v33 = vpop.permute.xlu1 %657 }
 0x20a   : > { %v647_v0 = vpop.permute.xlu0 %646 }
 0x20b   : > { %v662_v34 = vpop.permute.xlu1 %661  ;;  %v654_v42 = vmul.f32 %v647_v0, %v363_v30 }
 0x20e   : > { %v652_v37 = vpop.permute.xlu0 %651 }
 0x20f   : > { %v655_v48 = vmul.f32 %v652_v37, %v364_v31 }
 0x212   : > { %v674_v35 = vpop.permute.xlu1 %673 }
 0x213   : > { %v670_v38 = vpop.permute.xlu0 %669 }
 0x217   : > { %v682_v36 = vpop.permute.xlu1 %681 }
 0x21a   : > { %v686_v54 = vpop.permute.xlu0 %685 }
 0x21e   : > { %v694_v39 = vpop.permute.xlu1 %693 }
 0x222   : > { %v698_v58 = vpop.permute.xlu1 %697 }
 0x27b   : > { %v592_v40 = vpop.f32.mrb[0].mxu0  ;;  %v635_v41 = vpop.f32.mrb[0].mxu1 }
 0x27c   : > { %v664_v43 = vmul.f32 %v658_v33, %v592_v40  ;;  %v594_v44 = vpop.f32.mrb[1].mxu0  ;;  %v637_v45 = vpop.f32.mrb[1].mxu1  ;;  %v688_v55 = vmul.f32 %v682_v36, %v635_v41 }
 0x27d   : > { %v676_v1 = vmul.f32 %v670_v38, %v594_v44  ;;  %v596_v46 = vpop.f32.mrb[2].mxu0  ;;  %v639_v47 = vpop.f32.mrb[2].mxu1  ;;  %v700_v60 = vmul.f32 %v694_v39, %v637_v45 }
 0x27e   : > { %v666_v49 = vadd.f32 %v664_v43, %v654_v42  ;;  %v665_v50 = vmul.f32 %v662_v34, %v596_v46  ;;  %v598_v51 = vpop.f32.mrb[3].mxu0  ;;  %v641_v52 = vpop.f32.mrb[3].mxu1  ;;  %v689_v62 = vmul.f32 %v686_v54, %v639_v47 }
 0x27f   : > { %v677_v53 = vmul.f32 %v674_v35, %v598_v51  ;;  %v701_v3 = vmul.f32 %v698_v58, %v641_v52 }
 0x280   : > { %v678_v56 = vadd.f32 %v676_v1, %v666_v49  ;;  %v667_v57 = vadd.f32 %v665_v50, %v655_v48 }
 0x282   : > { %v690_v59 = vadd.f32 %v688_v55, %v678_v56  ;;  %v679_v61 = vadd.f32 %v677_v53, %v667_v57 }
 0x284   : > { %v702_v63 = vadd.f32 %v700_v60, %v690_v59  ;;  %v691_v2 = vadd.f32 %v689_v62, %v679_v61 }
 0x286   : > { %v703_v4 = vadd.f32 %v701_v3, %v691_v2  ;;  %v704_v5 = vand.u32 2147483647, %v702_v63 }
 0x288   : > { %706 = vadd.xlane.f32.xlu0 %v704_v5  ;;  %v705_v6 = vand.u32 2147483647, %v703_v4 }
 0x28a   : > { %708 = vadd.xlane.f32.xlu1 %v705_v6 }
 0x315   : > { %v707_v7 = vpop.xlane.xlu0 %706 }
 0x316   : > { %v710_v8 = vmax.f32 %v707_v7, 1e-06 }
 0x317   : > { %v709_v9 = vpop.xlane.xlu1 %708 }
 0x318   : > { %1008 = vrcp.f32 %v710_v8  ;;  %v711_v10 = vmax.f32 %v709_v9, 1e-06 }
 0x31a   : > { %1010 = vrcp.f32 %v711_v10 }
 0x322   : > { %v1009_v11 = vpop.eup %1008 }
 0x323   : > { %v714_v12 = vmul.f32 %v1009_v11, %v702_v63 }
 0x324   : > { %v1011_v13 = vpop.eup %1010 }
 0x325   : > { %716 = vst [vmem:[#allocation7] sm:$0xff] %v714_v12  ;;  %v715_v14 = vmul.f32 %v1011_v13, %v703_v4 }
 0x327   : > { %717 = vst [vmem:[#allocation7 + $0x8] sm:$0xff] %v715_v14 }
 0x328 PF: > { %p1310_p4 = scmp.eq.s32.totalorder %s824_s18, 1  ;;  %s1146_s12 = smov [#allocation7]  }
 0x329   : > { %s727_s13 = sshll.u32 %s1146_s12, 4  ;;  %s728_s13 = int_to_ptr.vmem [resolvable:$true] %s727_s13 }
 0x32a   : > { %s1068_s14 = scalar_lea.vmem %s728_s13, 256  ;;  %p1075_p12 = scmp.lt.s32.totalorder %s728_s13, %s728_s13 }
 0x32b   : > { %p1069_p9 = scmp.ne.s32.totalorder %s728_s13, %s1068_s14  ;;  %p1076_p13 = scmp.lt.s32.totalorder %s1068_s14, %s1068_s14 }
 0x32d   : > { %p1070_p10 = pnand %p1069_p9, %p1310_p4  ;;  %p1077_p0 = por %p1076_p13, %p1075_p12 }
 0x32f   : > { %p1071_p11 = pneg %p1070_p10 }
 0x331   : > { %p1078_p1 = pnand %p1077_p0, %p1071_p11 }
 0x333   : > { %1081 = shalt.err (!%p1078_p1)
}
 0x334   : > { %s1082_s18 = scalar_lea.hbm %s1349_s4, 256 }
 0x335   : > { %p1083_p2 = scmp.ne.s32.totalorder %s1349_s4, %s1082_s18  ;;  %p1088_p8 = scmp.lt.u32.totalorder %s1082_s18, %s1349_s4 }
 0x337   : > { %p1084_p5 = pnand %p1083_p2, %p1310_p4 }
 0x339   : > { %p1085_p7 = pneg %p1084_p5 }
 0x33b   : > { %p1090_p6 = pnand %p1088_p8, %p1085_p7 }
 0x33d   : > { %1093 = shalt.err (!%p1090_p6)
}
 0x33e   : > { %s1147_s30 = smov 128   ;;  %s1148_s5 = smov 8  }
 0x33f   : > { %881 = dma.vmem_to_hbm [thread:$0]  (%p1310_p4), %s728_s13, 256, %s1349_s4, [#allocation4], %s1147_s30, %s1147_s30, %s1148_s5  }
 0x340   : > { %1115 = dma.done.wait (%p1310_p4), [#allocation4], 256  }
 0x341   : > { %1117 = vsyncadd (%p1310_p4), [#allocation4], 4294967040 }
 0x342 PF: > { %s17_s17 = sadd.s32 1, %s1128_s17   ;;  %s1359_s15 = smov %s1124_s16 }
 0x343   : > { %p14_p3 = scmp.ge.s32.totalorder %s17_s17, 4   ;;  %s1360_s16 = smov %s1362_s19 }
 0x345   :  { %16 = sbr.rel (!%p14_p3) target bundleno = 4 (0x4), region = 86 }
 0x34c   :  { %743 = vsyncpa [#allocation3], 1 }
 0x34d   :  { %745 = vsyncpa [#allocation3 + $0x1], 1 }
 0x34e   :  { %746 = vsyncpa [#allocation6], 1 }
 0x34f   :  { %747 = vsyncpa [#allocation4], 1 }
 0x350   :  { %749 = vsyncpa [#allocation4 + $0x1], 1 }

</bundles_post_ra>
